<compile_context>
chip_gen: v7x
topology: tpu7x:2x2x1
jax: 0.10.0
libtpu: 0.0.40
codegen_flags: <defaults>
</compile_context>

<pallas_src>
import jax
import jax.numpy as jnp
from jax.experimental import pallas as pl
from jax.experimental.pallas import tpu as pltpu


def attention_merge_kernel(v_ref, m_ref, w_ref, b_ref, q_ref, o_ref):
    # v_ref : (TB, L, H)  values block (native dtype)
    # m_ref : (TB, L, 1)  mask column: 0.0 if mask is None, else (1 - mask) * -1000
    # w_ref : (H, A)      Linear weight (pre-transposed, values dtype)
    # b_ref : (1, A)      Linear bias (f32)
    # q_ref : (1, A)      query row, pre-scaled by 1 / sqrt(A * var(query)) (f32)
    # o_ref : (TB, H)     per-batch context
    TB, L, H = v_ref.shape
    A = w_ref.shape[1]

    v = v_ref[...]                                                      # (TB, L, H)

    # Projection on the MXU with M = TB*L, native-dtype operands, f32 accumulate.
    keys = jnp.tanh(
        jnp.dot(v.reshape(TB * L, H), w_ref[...],
                preferred_element_type=jnp.float32)
        + b_ref[...]
    )                                                                   # (TB*L, A) f32

    # keys . query : VPU multiply + lane reduction (query already scaled).
    scores = jnp.sum(keys.reshape(TB, L, A) * q_ref[...],
                     axis=-1, keepdims=True)                            # (TB, L, 1)

    # Every hidden column of (scores * mask) is identical, so the softmax over
    # the sequence axis is computed once per (batch, position) column.
    logits = scores * m_ref[...]                                        # (TB, L, 1)
    mx = jnp.max(logits, axis=1, keepdims=True)                         # (TB, 1, 1)
    ex = jnp.exp(logits - mx)                                           # (TB, L, 1)
    denom = jnp.sum(ex, axis=1, keepdims=True)                          # (TB, 1, 1)
    probs_sum = jnp.sum(ex / denom, axis=1)                             # (TB, 1)

    # TODO(synk): dropout on attention_probs is modeled as identity (eval mode).
    # context = sum_L (probs + values) = sum_L probs + sum_L values (f32 accumulate)
    v_sum = jnp.sum(v.astype(jnp.float32), axis=1)                      # (TB, H)
    o_ref[...] = (probs_sum + v_sum).astype(o_ref.dtype)                # (TB, H)


def _pick_batch_tile(B, L, H, itemsize, values_vmem_budget=8 << 20):
    """Pick a batch tile TB such that the double-buffered values tile
    (2 * TB * L * H * itemsize) fits a conservative VMEM budget, TB divides B,
    and TB == B or TB % 8 == 0 (keeps the (TB, H) output block layout legal)."""
    cap = max(1, values_vmem_budget // (2 * L * H * itemsize))
    if B <= cap:
        # Prefer >= 2 grid steps when legal so both megacore TensorCores get work.
        if B % 2 == 0 and (B // 2) % 8 == 0:
            return B // 2
        return B
    tb = min(cap, B)
    tb -= tb % 8
    while tb >= 8 and B % tb:
        tb -= 8
    return tb if tb >= 8 else B


def attention_merge(values, W, bias, query, mask=None):
    """values: (B, L, H); W: (H, A) pre-transposed; bias: (A,); query: (A, 1);
    mask: (B, L) of {0,1} or None."""
    B, L, H = values.shape
    A = W.shape[1]

    # Mask factor as a (B, L, 1) column only -- never a (B, L, H) stream.
    if mask is None:
        mcol = jnp.zeros((B, L, 1), dtype=jnp.float32)
    else:
        mcol = (1.0 - mask.astype(jnp.float32))[..., None] * -1000.0    # (B, L, 1)

    # torch.var default is unbiased (ddof=1); fold the scale into the query.
    q_var = jnp.var(query, ddof=1)
    scale = 1.0 / jnp.sqrt(A * q_var)
    q_scaled = (query.reshape(1, A) * scale).astype(jnp.float32)        # (1, A)

    # Match MXU operand dtypes to the values dtype (bf16 stays on the fast path).
    W_cast = W.astype(values.dtype)

    TB = _pick_batch_tile(B, L, H, values.dtype.itemsize)
    grid = (B // TB,)

    return pl.pallas_call(
        attention_merge_kernel,
        out_shape=jax.ShapeDtypeStruct((B, H), values.dtype),
        grid_spec=pltpu.PrefetchScalarGridSpec(
            num_scalar_prefetch=0,
            grid=grid,
            in_specs=[
                pl.BlockSpec((TB, L, H), lambda b: (b, 0, 0)),   # values tile
                pl.BlockSpec((TB, L, 1), lambda b: (b, 0, 0)),   # mask column
                pl.BlockSpec((H, A), lambda b: (0, 0)),          # weight (resident)
                pl.BlockSpec((1, A), lambda b: (0, 0)),          # bias
                pl.BlockSpec((1, A), lambda b: (0, 0)),          # scaled query
            ],
            out_specs=pl.BlockSpec((TB, H), lambda b: (b, 0)),
        ),
        compiler_params=pltpu.CompilerParams(
            dimension_semantics=("parallel",),
            vmem_limit_bytes=32 << 20,   # safe on v5e/v6e/v7x; tiles sized well below it
        ),
    )(values, mcol, W_cast, bias.reshape(1, A).astype(jnp.float32), q_scaled)


def attention_merge_reference(values, W, bias, query, mask=None):
    """Pure-JAX reference mirroring the PyTorch forward exactly."""
    A = W.shape[1]
    if mask is None:
        m = jnp.zeros_like(values)
    else:
        m = (1.0 - mask[..., None].astype(jnp.float32)) * -1000.0
    keys = jnp.tanh(values @ W + bias)
    q_var = jnp.var(query, ddof=1)
    probs = (keys @ query) / jnp.sqrt(A * q_var)
    probs = jax.nn.softmax(probs * m, axis=1)
    return jnp.sum(probs + values, axis=1)


if __name__ == "__main__":
    key = jax.random.PRNGKey(0)
    k_v, k_w, k_b, k_q, k_m, k_v2, k_m2 = jax.random.split(key, 7)

    # Small shapes implied by the module: (B, L, H) -> (B, H), attention size A.
    B, L, H, A = 2, 8, 32, 16
    values = jax.random.normal(k_v, (B, L, H), dtype=jnp.float32)
    W = jax.random.normal(k_w, (H, A), dtype=jnp.float32) * 0.02       # hidden_layer weight^T
    bias = jax.random.normal(k_b, (A,), dtype=jnp.float32) * 0.02      # hidden_layer bias
    query = jax.random.normal(k_q, (A, 1), dtype=jnp.float32) * 0.02   # query_ parameter
    mask = (jax.random.uniform(k_m, (B, L)) > 0.3).astype(jnp.float32)

    # mask=None path
    out_none = jax.block_until_ready(attention_merge(values, W, bias, query, None))
    ref_none = attention_merge_reference(values, W, bias, query, None)
    assert jnp.allclose(out_none, ref_none, atol=1e-4, rtol=1e-4)

    # explicit mask path
    out_mask = jax.block_until_ready(attention_merge(values, W, bias, query, mask))
    ref_mask = attention_merge_reference(values, W, bias, query, mask)
    assert jnp.allclose(out_mask, ref_mask, atol=1e-4, rtol=1e-4)

    # larger batch exercises the batch-tiled grid (TB=8 -> 2 parallel grid steps)
    B2 = 16
    values2 = jax.random.normal(k_v2, (B2, L, H), dtype=jnp.float32)
    mask2 = (jax.random.uniform(k_m2, (B2, L)) > 0.3).astype(jnp.float32)
    out2 = jax.block_until_ready(attention_merge(values2, W, bias, query, mask2))
    ref2 = attention_merge_reference(values2, W, bias, query, mask2)
    assert jnp.allclose(out2, ref2, atol=1e-4, rtol=1e-4)

    print("KERNEL_OK")
</pallas_src>

<mosaic_0001>
module attributes {stable_mosaic.version = 11 : i64} {
  func.func @attention_merge_kernel(%arg0: i32, %arg1: memref<2x8x32xf32, #tpu.memory_space<vmem>>, %arg2: memref<2x8x1xf32, #tpu.memory_space<vmem>>, %arg3: memref<32x16xf32, #tpu.memory_space<vmem>>, %arg4: memref<1x16xf32, #tpu.memory_space<vmem>>, %arg5: memref<1x16xf32, #tpu.memory_space<vmem>>, %arg6: memref<2x32xf32, #tpu.memory_space<vmem>>) attributes {dimension_semantics = [#tpu.dimension_semantics<parallel>], iteration_bounds = array<i64: 1>, scalar_prefetch = 0 : i64, scratch_operands = 0 : i64, tpu.core_type = #tpu.core_type<tc>, window_params = [{transform_indices = @transform_0, window_bounds = array<i64: 2, 8, 32>}, {transform_indices = @transform_1, window_bounds = array<i64: 2, 8, 1>}, {pipeline_mode = #tpu.pipeline_mode<synchronous>, transform_indices = @transform_2, window_bounds = array<i64: 32, 16>}, {pipeline_mode = #tpu.pipeline_mode<synchronous>, transform_indices = @transform_3, window_bounds = array<i64: 1, 16>}, {pipeline_mode = #tpu.pipeline_mode<synchronous>, transform_indices = @transform_4, window_bounds = array<i64: 1, 16>}, {transform_indices = @transform_5, window_bounds = array<i64: 2, 32>}]} {
    %c0 = arith.constant 0 : index
    %c0_0 = arith.constant 0 : index
    %c0_1 = arith.constant 0 : index
    %0 = vector.load %arg1[%c0, %c0_0, %c0_1] : memref<2x8x32xf32, #tpu.memory_space<vmem>>, vector<2x8x32xf32>
    %1 = vector.shape_cast %0 : vector<2x8x32xf32> to vector<16x32xf32>
    %c0_2 = arith.constant 0 : index
    %c0_3 = arith.constant 0 : index
    %2 = vector.load %arg3[%c0_2, %c0_3] : memref<32x16xf32, #tpu.memory_space<vmem>>, vector<32x16xf32>
    %cst = arith.constant dense<0.000000e+00> : vector<16x16xf32>
    %3 = tpu.matmul %1, %2, %cst {dimension_numbers = #tpu.dot_dimension_numbers<[1], [0], [0], [1], [0, 0, 1, 1], [], []>} : vector<16x32xf32>, vector<32x16xf32>, vector<16x16xf32> -> vector<16x16xf32>
    %c0_4 = arith.constant 0 : index
    %c0_5 = arith.constant 0 : index
    %4 = vector.load %arg4[%c0_4, %c0_5] : memref<1x16xf32, #tpu.memory_space<vmem>>, vector<1x16xf32>
    %5 = vector.broadcast %4 : vector<1x16xf32> to vector<16x16xf32>
    %6 = arith.addf %3, %5 : vector<16x16xf32>
    %7 = math.tanh %6 : vector<16x16xf32>
    %8 = vector.shape_cast %7 : vector<16x16xf32> to vector<2x8x16xf32>
    %c0_6 = arith.constant 0 : index
    %c0_7 = arith.constant 0 : index
    %9 = vector.load %arg5[%c0_6, %c0_7] : memref<1x16xf32, #tpu.memory_space<vmem>>, vector<1x16xf32>
    %10 = vector.shape_cast %9 : vector<1x16xf32> to vector<1x1x16xf32>
    %11 = vector.broadcast %10 : vector<1x1x16xf32> to vector<2x8x16xf32>
    %12 = arith.mulf %8, %11 : vector<2x8x16xf32>
    %cst_8 = arith.constant dense<0.000000e+00> : vector<2x8xf32>
    %13 = vector.multi_reduction <add>, %12, %cst_8 [2] : vector<2x8x16xf32> to vector<2x8xf32>
    %14 = vector.shape_cast %13 : vector<2x8xf32> to vector<2x8x1xf32>
    %c0_9 = arith.constant 0 : index
    %c0_10 = arith.constant 0 : index
    %c0_11 = arith.constant 0 : index
    %15 = vector.load %arg2[%c0_9, %c0_10, %c0_11] : memref<2x8x1xf32, #tpu.memory_space<vmem>>, vector<2x8x1xf32>
    %16 = arith.mulf %14, %15 : vector<2x8x1xf32>
    %cst_12 = arith.constant dense<0xFF800000> : vector<2x1xf32>
    %17 = vector.multi_reduction <maximumf>, %16, %cst_12 [1] : vector<2x8x1xf32> to vector<2x1xf32>
    %18 = vector.shape_cast %17 : vector<2x1xf32> to vector<2x1x1xf32>
    %19 = vector.broadcast %18 : vector<2x1x1xf32> to vector<2x8x1xf32>
    %20 = arith.subf %16, %19 : vector<2x8x1xf32>
    %21 = math.exp %20 : vector<2x8x1xf32>
    %cst_13 = arith.constant dense<0.000000e+00> : vector<2x1xf32>
    %22 = vector.multi_reduction <add>, %21, %cst_13 [1] : vector<2x8x1xf32> to vector<2x1xf32>
    %23 = vector.shape_cast %22 : vector<2x1xf32> to vector<2x1x1xf32>
    %24 = vector.broadcast %23 : vector<2x1x1xf32> to vector<2x8x1xf32>
    %25 = arith.divf %21, %24 : vector<2x8x1xf32>
    %cst_14 = arith.constant dense<0.000000e+00> : vector<2x1xf32>
    %26 = vector.multi_reduction <add>, %25, %cst_14 [1] : vector<2x8x1xf32> to vector<2x1xf32>
    %cst_15 = arith.constant dense<0.000000e+00> : vector<2x32xf32>
    %27 = vector.multi_reduction <add>, %0, %cst_15 [1] : vector<2x8x32xf32> to vector<2x32xf32>
    %28 = vector.broadcast %26 : vector<2x1xf32> to vector<2x32xf32>
    %29 = arith.addf %28, %27 : vector<2x32xf32>
    %c0_16 = arith.constant 0 : index
    %c0_17 = arith.constant 0 : index
    %30 = vector.load %arg6[%c0_16, %c0_17] : memref<2x32xf32, #tpu.memory_space<vmem>>, vector<2x32xf32>
    tpu.vector_store %arg6[%c0_16, %c0_17], %29 {strides = array<i32>} : memref<2x32xf32, #tpu.memory_space<vmem>>, vector<2x32xf32>,
    return
  }
  func.func @transform_0(%arg0: i32) -> (i32, i32, i32) {
    %c0_i32 = arith.constant 0 : i32
    %c0_i32_0 = arith.constant 0 : i32
    %c0_i32_1 = arith.constant 0 : i32
    return %arg0, %c0_i32, %c0_i32_0 : i32, i32, i32
  }
  func.func @transform_1(%arg0: i32) -> (i32, i32, i32) {
    %c0_i32 = arith.constant 0 : i32
    %c0_i32_0 = arith.constant 0 : i32
    %c0_i32_1 = arith.constant 0 : i32
    return %arg0, %c0_i32, %c0_i32_0 : i32, i32, i32
  }
  func.func @transform_2(%arg0: i32) -> (i32, i32) {
    %c0_i32 = arith.constant 0 : i32
    %c0_i32_0 = arith.constant 0 : i32
    %c0_i32_1 = arith.constant 0 : i32
    return %c0_i32, %c0_i32_0 : i32, i32
  }
  func.func @transform_3(%arg0: i32) -> (i32, i32) {
    %c0_i32 = arith.constant 0 : i32
    %c0_i32_0 = arith.constant 0 : i32
    %c0_i32_1 = arith.constant 0 : i32
    return %c0_i32, %c0_i32_0 : i32, i32
  }
  func.func @transform_4(%arg0: i32) -> (i32, i32) {
    %c0_i32 = arith.constant 0 : i32
    %c0_i32_0 = arith.constant 0 : i32
    %c0_i32_1 = arith.constant 0 : i32
    return %c0_i32, %c0_i32_0 : i32, i32
  }
  func.func @transform_5(%arg0: i32) -> (i32, i32) {
    %c0_i32 = arith.constant 0 : i32
    %c0_i32_0 = arith.constant 0 : i32
    return %arg0, %c0_i32 : i32, i32
  }
}

</mosaic_0001>

<bundles_post_ra>
// kernel: tpu_custom_call.1
= control target key start
LH: loop header
LB: loop body
LE: loop exit
PB: predicated region body
PF: predicated region fallthrough
CT: control target
= control target key end

     0   :  { %vm34_vm0 = vcmask 261120   ;;  %s395_s0 = inlined_call_operand.vmem [shape: f32[2,8,32], index: 0, kind: input, shape index: {}]   ;;  %s396_s1 = inlined_call_operand.vmem [shape: f32[2,8,1], index: 1, kind: input, shape index: {}]   ;;  %s397_s2 = inlined_call_operand.vmem [shape: f32[32,16], index: 2, kind: input, shape index: {}]   ;;  %s398_s3 = inlined_call_operand.vmem [shape: f32[1,16], index: 3, kind: input, shape index: {}]   ;;  %s399_s4 = inlined_call_operand.vmem [shape: f32[1,16], index: 4, kind: input, shape index: {}]   ;;  %s400_s5 = inlined_call_operand.hbm [shape: f32[2,32], index: 5, kind: output, shape index: {}]  }
   0x1   :  { %v23_v0 = vld [vmem:[%s397_s2] sm:$0xff]  ;;  %v24_v1 = vld [vmem:[%s397_s2 + $0x8] sm:$0xff]  ;;  %v25_v2 = vld [vmem:[%s397_s2 + $0x10] sm:$0xff] }
   0x2   :  { %v259_v3 = vpack.c.bf16 %v24_v1, %v23_v0  ;;  %v26_v4 = vld [vmem:[%s397_s2 + $0x18] sm:$0xff]  ;;  %v21_v5 = vld [vmem:[%s395_s0] sm:$0xff]  ;;  %v22_v6 = vld [vmem:[%s395_s0 + $0x8] sm:$0xff] }
   0x3   :  { %v263_v7 = vpack.c.bf16 %v26_v4, %v25_v2  ;;  %256 = vmatprep.mubr.msk.f32.mxu0 %vm34_vm0, %v21_v5  ;;  %v357_v8 = vsel %vm34_vm0, %v21_v5, 0.0  ;;  %v359_v9 = vsel %vm34_vm0, %v22_v6, 0.0 }
   0x4   :  { %10 = vsyncpa [#allocation3], 0  ;;  %260 = vmatprep.subr.bf16.mxu0 %v259_v3  ;;  %v238_v10 = vld [vmem:[%s398_s3] ss:$0 sm:$0xff]  ;;  %vm127_vm1 = vcmask 130048   ;;  %v307_v22 = vmov 0  }
   0x5   :  { %262 = vmatpush3.bf16.msra.mxu0 %v259_v3  ;;  %v241_v15 = vld [vmem:[%s399_s4] ss:$0 sm:$0xff]  ;;  %269 = vset.pattern.permute.xlu1 %v307_v22  ;;  %vm138_vm2 = vcmask 7168   ;;  %v135_v26 = vld [vmem:[%s396_s1 + $0x8] sm:$0xff]  ;;  %vm219_vm3 = vcmask 1041409   ;;  %vm222_vm4 = vcmask 254976  }
   0x6   :  { %264 = vmatprep.subr.bf16.mxu0 %v263_v7  ;;  %270 = vset.pattern.permute.xlu0 %v307_v22  ;;  %v134_v23 = vld [vmem:[%s396_s1] sm:$0xff]  ;;  %s308_s1 = smov [#allocation2]  }
   0x7   :  { %s230_s9 = sshll.u32 %s308_s1, 4  ;;  %s231_s9 = int_to_ptr.vmem [resolvable:$true] %s230_s9 }
   0x8   :  { %s283_s10 = scalar_lea.vmem %s231_s9, 32  ;;  %p288_p1 = scmp.lt.s32.totalorder %s231_s9, %s231_s9 }
   0x9   :  { %266 = vmatpush3.bf16.msra.mxu0 %v263_v7  ;;  %p284_p0 = scmp.ne.s32.totalorder %s231_s9, %s283_s10  ;;  %p289_p2 = scmp.lt.s32.totalorder %s283_s10, %s283_s10 }
   0xb   :  { %p290_p3 = por %p289_p2, %p288_p1 }
   0xc   :  { %257 = vmatmul.mubr.msk.f32.vlgmr.msra.gmra.mrb[0].mxu0 %vm34_vm0, %v22_v6 }
   0xd   :  { %p291_p4 = pnand %p290_p3, %p284_p0 }
  0xdf   :  { %v258_v11 = vpop.f32.mrb[0].mxu0 }
  0xe0   :  { %v113_v12 = vadd.f32 %v258_v11, %v238_v10  ;;  %v107_v13 = vpop.f32.mrb[1].mxu0 }
  0xe1   :  { %v108_v14 = vadd.f32 %v238_v10, %v107_v13 }
  0xe2   :  { %271 = vtanh.f32 %v113_v12 }
  0xe3   :  { %273 = vtanh.f32 %v108_v14 }
  0xec   :  { %v272_v16 = vpop.eup %271 }
  0xed   :  { %v274_v17 = vpop.eup %273  ;;  %v126_v20 = vmul.f32 %v272_v16, %v241_v15 }
  0xee   :  { %v125_v18 = vmul.f32 %v274_v17, %v241_v15 }
  0xef   :  { %v131_v21 = vsel %vm127_vm1, %v126_v20, 0.0  ;;  %v199_v20 = vrot.slane %v359_v9, 4 }
  0xf0   :  { %v128_v19 = vsel %vm127_vm1, %v125_v18, 0.0 }
  0xf1   :  { %129 = vadd.xlane.f32.xlu0 %v128_v19  ;;  %v192_v19 = vrot.slane %v357_v8, 4  ;;  %v200_v22 = vadd.f32 %v199_v20, %v359_v9 }
  0xf5   :  { %132 = vadd.xlane.f32.xlu0 %v131_v21  ;;  %v193_v21 = vadd.f32 %v192_v19, %v357_v8 }
 0x17e   :  { %v130_v24 = vpop.xlane.xlu0 %129 }
 0x17f   :  { %v136_v25 = vmul.f32 %v134_v23, %v130_v24  ;;  %v194_v23 = vrot.slane %v193_v21, 2  ;;  %v201_v24 = vrot.slane %v200_v22, 2 }
 0x181   :  { %v139_v27 = vsel %vm138_vm2, %v136_v25, -inf }
 0x182   :  { %v140_v28 = vrot.slane %v139_v27, 4  ;;  %v133_v29 = vpop.xlane.xlu0 %132 }
 0x183   :  { %v137_v30 = vmul.f32 %v135_v26, %v133_v29  ;;  %v202_v26 = vadd.f32 %v201_v24, %v200_v22 }
 0x184   :  { %v141_v31 = vmax.f32 %v139_v27, %v140_v28 }
 0x185   :  { %v146_v32 = vsel %vm138_vm2, %v137_v30, -inf  ;;  %v203_v28 = vrot.slane %v202_v26, 1 }
 0x186   :  { %v142_v33 = vrot.slane %v141_v31, 2  ;;  %v147_v34 = vrot.slane %v146_v32, 4 }
 0x188   :  { %v143_v35 = vmax.f32 %v141_v31, %v142_v33  ;;  %v148_v36 = vmax.f32 %v146_v32, %v147_v34  ;;  %v204_v31 = vadd.f32 %v203_v28, %v202_v26 }
 0x18a   :  { %v144_v37 = vrot.slane %v143_v35, 1  ;;  %v149_v38 = vrot.slane %v148_v36, 2 }
 0x18c   :  { %v145_v39 = vmax.f32 %v143_v35, %v144_v37  ;;  %v150_v40 = vmax.f32 %v148_v36, %v149_v38 }
 0x18e   :  { %v153_v41 = vsub.f32 %v136_v25, %v145_v39  ;;  %v151_v42 = vrot.slane %v150_v40, 1  ;;  %v195_v25 = vadd.f32 %v194_v23, %v193_v21 }
 0x190   :  { %v155_v43 = vmul.f32 1.442695, %v153_v41  ;;  %v152_v44 = vmax.f32 %v150_v40, %v151_v42  ;;  %v196_v27 = vrot.slane %v195_v25, 1 }
 0x192   :  { %275 = vpow2.f32 %v155_v43  ;;  %v154_v45 = vsub.f32 %v137_v30, %v152_v44  ;;  %v197_v30 = vadd.f32 %v196_v27, %v195_v25 }
 0x194   :  { %v157_v46 = vmul.f32 1.442695, %v154_v45 }
 0x196   :  { %277 = vpow2.f32 %v157_v46 }
 0x19c   :  { %v276_v47 = vpop.eup %275 }
 0x19d   :  { %v159_v48 = vsel %vm138_vm2, %v276_v47, 0.0 }
 0x19e   :  { %v160_v49 = vrot.slane %v159_v48, 4 }
 0x1a0   :  { %v278_v50 = vpop.eup %277  ;;  %v161_v51 = vadd.f32 %v160_v49, %v159_v48 }
 0x1a1   :  { %v166_v52 = vsel %vm138_vm2, %v278_v50, 0.0 }
 0x1a2   :  { %v162_v53 = vrot.slane %v161_v51, 2  ;;  %v167_v54 = vrot.slane %v166_v52, 4 }
 0x1a4   :  { %v163_v55 = vadd.f32 %v162_v53, %v161_v51  ;;  %v168_v56 = vadd.f32 %v167_v54, %v166_v52 }
 0x1a6   :  { %v164_v57 = vrot.slane %v163_v55, 1  ;;  %v169_v58 = vrot.slane %v168_v56, 2 }
 0x1a8   :  { %v165_v59 = vadd.f32 %v164_v57, %v163_v55  ;;  %v170_v60 = vadd.f32 %v169_v58, %v168_v56 }
 0x1aa   :  { %v171_v61 = vrot.slane %v170_v60, 1  ;;  %279 = vrcp.f32 %v165_v59 }
 0x1ac   :  { %v172_v62 = vadd.f32 %v171_v61, %v170_v60 }
 0x1ae   :  { %281 = vrcp.f32 %v172_v62 }
 0x1b4   :  { %v280_v63 = vpop.eup %279 }
 0x1b5   :  { %v174_v0 = vmul.f32 %v280_v63, %v276_v47 }
 0x1b7   :  { %v177_v1 = vsel %vm138_vm2, %v174_v0, 0.0 }
 0x1b8   :  { %v282_v2 = vpop.eup %281  ;;  %v178_v3 = vrot.slane %v177_v1, 4 }
 0x1b9   :  { %v176_v4 = vmul.f32 %v282_v2, %v278_v50 }
 0x1ba   :  { %v179_v5 = vadd.f32 %v178_v3, %v177_v1 }
 0x1bb   :  { %v184_v6 = vsel %vm138_vm2, %v176_v4, 0.0 }
 0x1bc   :  { %v180_v7 = vrot.slane %v179_v5, 2  ;;  %v185_v10 = vrot.slane %v184_v6, 4 }
 0x1be   :  { %v181_v11 = vadd.f32 %v180_v7, %v179_v5  ;;  %v186_v12 = vadd.f32 %v185_v10, %v184_v6 }
 0x1c0   :  { %v182_v13 = vrot.slane %v181_v11, 1  ;;  %v187_v14 = vrot.slane %v186_v12, 2 }
 0x1c2   :  { %v183_v15 = vadd.f32 %v182_v13, %v181_v11  ;;  %v188_v16 = vadd.f32 %v187_v14, %v186_v12 }
 0x1c4   :  { %207 = vperm.xlu1 %269, %v183_v15   ;;  %v189_v17 = vrot.slane %v188_v16, 1 }
 0x1c6   :  { %v190_v18 = vadd.f32 %v189_v17, %v188_v16 }
 0x1c8   :  { %212 = vperm.xlu1 %269, %v190_v18  }
 0x243   :  { %v208_v29 = vpop.permute.xlu1 %207 }
 0x244   :  { %v215_v33 = vadd.f32 %v208_v29, %v197_v30 }
 0x247   :  { %v213_v32 = vpop.permute.xlu1 %212 }
 0x248   :  { %v216_v34 = vadd.f32 %v213_v32, %v204_v31 }
 0x24a   :  { %v220_v8 = vsel %vm219_vm3, %v216_v34, %v215_v33 }
 0x24b   :  { %223 = vst.msk [vmem:[#allocation2] sm:$0x3] %vm222_vm4, %v220_v8 }
 0x24c   :  { %294 = shalt.err (!%p291_p4)
}
 0x24d   :  { %s295_s13 = scalar_lea.hbm %s400_s5, 32 }
 0x24e   :  { %p296_p5 = scmp.ne.s32.totalorder %s400_s5, %s295_s13  ;;  %p299_p6 = scmp.lt.u32.totalorder %s295_s13, %s400_s5 }
 0x250   :  { %p301_p7 = pnand %p299_p6, %p296_p5 }
 0x252   :  { %304 = shalt.err (!%p301_p7)
}
 0x253   :  { %233 = dma.vmem_to_hbm [thread:$0]  %s231_s9, 32, %s400_s5, [#allocation3]  }
 0x254   :  { %305 = dma.done.wait [#allocation3], 32  }
 0x255   :  { %306 = vsyncadd [#allocation3], 4294967264 }
 0x256   :  { %237 = vsyncpa [#allocation3], 1 }

</bundles_post_ra>
